<compile_context>
chip_gen: v7x
topology: tpu7x:2x2x1
jax: 0.10.0
libtpu: 0.0.40
codegen_flags: <defaults>
</compile_context>

<pallas_src>
import jax
import jax.numpy as jnp
from jax import lax
from jax.experimental import pallas as pl
from jax.experimental.pallas import tpu as pltpu


def _gpt_head_kernel(x_ref, w_ref, out_ref):
    # x_ref:   [tile_m, E] bf16  (tok_emb[idx] + pos_emb, pre-added & cast in wrapper;
    #                             trf_blocks / final_norm / dropout are identities)
    # w_ref:   [tile_n, E] bf16  (one V tile of the output-head weight, nn.Linear layout)
    # out_ref: [tile_m, tile_n]  (f32 by default; bf16 if logits_dtype=bf16)
    out_ref[...] = lax.dot_general(
        x_ref[...], w_ref[...],
        dimension_numbers=(((1,), (1,)), ((), ())),   # x @ w^T on the MXU
        preferred_element_type=jnp.float32,           # f32 accumulate
    ).astype(out_ref.dtype)


def dummy_gpt_forward(in_idx, tok_emb_table, pos_emb_table, out_head_w,
                      *, tile_m=1024, tile_n=2048, logits_dtype=jnp.float32):
    """in_idx: int32 [B, S]; returns logits [B, S, V] in `logits_dtype`.

    tile_m: rows of the flattened [B*S, E] activation per MXU call (multiple of 8, or
            the full M). Must exceed the chip's FLOP/byte crossover (~656 v6e, ~310 v7x,
            ~240 v5e) to hide the per-step weight DMA -> default 1024.
    tile_n: vocab columns per MXU call (multiple of 128, or the full V). Larger tiles
            mean fewer grid steps and bigger unmasked output stores.
    """
    B, S = in_idx.shape
    V, E = out_head_w.shape
    M = B * S

    tile_m = min(tile_m, M)
    tile_n = min(tile_n, V)

    # Glue (fuses into one XLA op): embedding gather + positional add + bf16 cast,
    # flattened to [M, E]. Dropout / DummyTransformerBlock / DummyLayerNorm = identity.
    x = jnp.take(tok_emb_table, in_idx, axis=0) + pos_emb_table[:S, :]   # [B, S, E] f32
    x = x.reshape(M, E).astype(jnp.bfloat16)                             # [M, E]   bf16

    # Weight kept un-transposed [V, E]; cast once to bf16 (free if stored bf16 upstream).
    w_bf16 = out_head_w.astype(jnp.bfloat16)

    grid = (pl.cdiv(M, tile_m), pl.cdiv(V, tile_n))

    logits_flat = pl.pallas_call(
        _gpt_head_kernel,
        out_shape=jax.ShapeDtypeStruct((M, V), logits_dtype),
        grid=grid,
        in_specs=[
            pl.BlockSpec((tile_m, E), lambda m, n: (m, 0)),
            pl.BlockSpec((tile_n, E), lambda m, n: (n, 0)),
        ],
        out_specs=pl.BlockSpec((tile_m, tile_n), lambda m, n: (m, n)),
        compiler_params=pltpu.CompilerParams(
            dimension_semantics=("parallel", "parallel"),
            # Portable budget: ~25 MB double-buffered footprint at 1024x2048xE=768 fits
            # v7x's 64 MiB per-core VMEM with headroom; also lifts v5e's 16 MiB default.
            vmem_limit_bytes=48 * 1024 * 1024,
        ),
    )(x, w_bf16)

    return logits_flat.reshape(B, S, V)


def reference_forward(in_idx, tok_emb_table, pos_emb_table, out_head_w):
    S = in_idx.shape[1]
    x = jnp.take(tok_emb_table, in_idx, axis=0) + pos_emb_table[:S, :]
    return jnp.einsum("bse,ve->bsv", x, out_head_w)


if __name__ == "__main__":
    # Small config consistent with the module's __init__.
    cfg = dict(vocab_size=256, context_length=16, emb_dim=32,
               n_layers=2, drop_rate=0.1)
    B, S = 2, 8

    key = jax.random.PRNGKey(0)
    k_tok, k_pos, k_out, k_idx = jax.random.split(key, 4)

    tok_emb_table = jax.random.normal(k_tok, (cfg["vocab_size"], cfg["emb_dim"]),
                                      dtype=jnp.float32)
    pos_emb_table = jax.random.normal(k_pos, (cfg["context_length"], cfg["emb_dim"]),
                                      dtype=jnp.float32)
    out_head_w = jax.random.normal(k_out, (cfg["vocab_size"], cfg["emb_dim"]),
                                   dtype=jnp.float32) * 0.02

    in_idx = jax.random.randint(k_idx, (B, S), 0, cfg["vocab_size"], dtype=jnp.int32)

    # Small tiles here so the toy config still exercises the (M-tile, V-tile) grid path
    # (grid = (2, 2)); realistic configs use the 1024/2048 defaults.
    logits = dummy_gpt_forward(in_idx, tok_emb_table, pos_emb_table, out_head_w,
                               tile_m=8, tile_n=128)
    logits = jax.block_until_ready(logits)

    ref = reference_forward(in_idx, tok_emb_table, pos_emb_table, out_head_w)
    assert logits.shape == (B, S, cfg["vocab_size"])
    # bf16 operands / f32 accumulate -> loose-but-tight-enough tolerance vs f32 reference.
    assert jnp.allclose(logits, ref, atol=2e-2, rtol=2e-2)

    print("KERNEL_OK")
</pallas_src>

<mosaic_0001>
module attributes {stable_mosaic.version = 11 : i64} {
  func.func @_gpt_head_kernel(%arg0: i32, %arg1: i32, %arg2: memref<8x32xbf16, #tpu.memory_space<vmem>>, %arg3: memref<128x32xbf16, #tpu.memory_space<vmem>>, %arg4: memref<8x128xf32, #tpu.memory_space<vmem>>) attributes {dimension_semantics = [#tpu.dimension_semantics<parallel>, #tpu.dimension_semantics<parallel>], iteration_bounds = array<i64: 2, 2>, scalar_prefetch = 0 : i64, scratch_operands = 0 : i64, tpu.core_type = #tpu.core_type<tc>, window_params = [{transform_indices = @transform_0, window_bounds = array<i64: 8, 32>}, {transform_indices = @transform_1, window_bounds = array<i64: 128, 32>}, {transform_indices = @transform_2, window_bounds = array<i64: 8, 128>}]} {
    %c0 = arith.constant 0 : index
    %c0_0 = arith.constant 0 : index
    %0 = vector.load %arg2[%c0, %c0_0] : memref<8x32xbf16, #tpu.memory_space<vmem>>, vector<8x32xbf16>
    %c0_1 = arith.constant 0 : index
    %c0_2 = arith.constant 0 : index
    %1 = vector.load %arg3[%c0_1, %c0_2] : memref<128x32xbf16, #tpu.memory_space<vmem>>, vector<128x32xbf16>
    %cst = arith.constant dense<0.000000e+00> : vector<8x128xf32>
    %2 = tpu.matmul %0, %1, %cst {dimension_numbers = #tpu.dot_dimension_numbers<[1], [1], [0], [0], [0, 0, 1, 0], [], []>} : vector<8x32xbf16>, vector<128x32xbf16>, vector<8x128xf32> -> vector<8x128xf32>
    %c0_3 = arith.constant 0 : index
    %c0_4 = arith.constant 0 : index
    %3 = vector.load %arg4[%c0_3, %c0_4] : memref<8x128xf32, #tpu.memory_space<vmem>>, vector<8x128xf32>
    tpu.vector_store %arg4[%c0_3, %c0_4], %2 {strides = array<i32>} : memref<8x128xf32, #tpu.memory_space<vmem>>, vector<8x128xf32>,
    return
  }
  func.func @transform_0(%arg0: i32, %arg1: i32) -> (i32, i32) {
    %c0_i32 = arith.constant 0 : i32
    %c0_i32_0 = arith.constant 0 : i32
    return %arg0, %c0_i32 : i32, i32
  }
  func.func @transform_1(%arg0: i32, %arg1: i32) -> (i32, i32) {
    %c0_i32 = arith.constant 0 : i32
    %c0_i32_0 = arith.constant 0 : i32
    return %arg1, %c0_i32 : i32, i32
  }
  func.func @transform_2(%arg0: i32, %arg1: i32) -> (i32, i32) {
    %c0_i32 = arith.constant 0 : i32
    return %arg0, %arg1 : i32, i32
  }
}

</mosaic_0001>

<bundles_post_ra>
// kernel: tpu_custom_call.1
= control target key start
LH: loop header
LB: loop body
LE: loop exit
PB: predicated region body
PF: predicated region fallthrough
CT: control target
= control target key end

     0   :  { %7 = vsyncpa [#allocation3], 0  ;;  %s807_s0 = inlined_call_operand.vmem [shape: bf16[16,32], index: 0, kind: input, shape index: {}]   ;;  %s808_s1 = inlined_call_operand.vmem [shape: bf16[256,32], index: 1, kind: input, shape index: {}]   ;;  %s809_s2 = inlined_call_operand.hbm [shape: f32[16,256], index: 2, kind: output, shape index: {}]  }
   0x1   :  { %9 = vsyncpa [#allocation3 + $0x1], 0  ;;  %s649_s9 = smov 0   ;;  %s651_s10 = smov 0  }
   0x2   :  { %s653_s11 = smov 0   ;;  %s655_s12 = smov 0  }
   0x3   :  { %s657_s13 = smov 0   ;;  %s659_s14 = smov 0  }
   0x4   :  { %s661_s15 = smov 0   ;;  %s663_s16 = smov 0  }
   0x5 LB: > { %s402_s17 = sadd.s32 4294967295, %s629_s16   ;;  %s403_s18 = sadd.s32 4294967294, %s629_s16   ;;  %s629_s16 = sphi %s663_s16, %s15_s16   ;;  %s625_s15 = sphi %s661_s15, %s818_s15   ;;  %s621_s14 = sphi %s659_s14, %s817_s14   ;;  %s617_s13 = sphi %s657_s13, %s816_s13   ;;  %s613_s12 = sphi %s655_s12, %s815_s12   ;;  %s609_s11 = sphi %s653_s11, %s814_s11   ;;  %s605_s10 = sphi %s651_s10, %s813_s10   ;;  %s601_s9 = sphi %s649_s9, %s812_s9  }
   0x6   : > { %s24_s19 = sadd.s32 1, %s621_s14  ;;  %s27_s20 = sadd.s32 1, %s625_s15 }
   0x7   : > { %p25_p0 = scmp.ge.s32.totalorder %s24_s19, 2  ;;  %p98_p1 = scmp.ne.s32.totalorder %s609_s11, %s605_s10 }
   0x8   : > { %p99_p2 = scmp.eq.s32.totalorder %s402_s17, 3  ;;  %p104_p5 = scmp.ne.s32.totalorder %s605_s10, %s601_s9 }
   0x9   : > { %s820_s19 = smov (%p25_p0, %s24_s19), 0  ;;  %s822_s20 = smov (!%p25_p0, %s27_s20), %s625_s15 }
   0xa   : > { %s84_s21 = ssub.s32 %s621_s14, %s820_s19  ;;  %p700_p3 = por %p99_p2, %p98_p1 }
   0xb   : > { %p29_p4 = scmp.ge.s32.totalorder %s822_s20, 2  ;;  %p105_p6 = scmp.eq.s32.totalorder %s403_s18, 3 }
   0xc   : > { %p406_p7 = scmp.ge.s32.totalorder %s629_s16, 1  ;;  %p139_p9 = scmp.lt.s32.totalorder %s629_s16, 5 }
   0xd   : > { %s824_s20 = smov (%p29_p4, %s822_s20), 0  ;;  %p709_p8 = por %p105_p6, %p104_p5 }
   0xe   : > { %s83_s24 = ssub.s32 %s625_s15, %s824_s20  ;;  %s88_s25 = sadd.s32 1, %s609_s11 }
   0xf   : > { %s85_s26 = sor.u32 %s84_s21, %s83_s24  ;;  %p140_p10 = pnand %p406_p7, %p139_p9 }
  0x10   : > { %p86_p11 = scmp.eq.s32.totalorder %s85_s26, 0  ;;  %s409_s28 = sshll.u32 (!%p140_p10), %s613_s12, 4  ;;  %v631_v0 = vmov (!%p140_p10), 0.0   ;;  %vm632_vm0 = vmmov (!%p140_p10), 0   ;;  %vm233_vm1 = vcmask (!%p140_p10), 261120  }
  0x11   : > { %143 = sbr.rel (%p140_p10) target bundleno = 319 (0x13f), region = 28  ;;  %434 = vmatprep.subr.bf16.mxu0 (!%p140_p10), %v631_v0  ;;  %p170_p12 = scmp.lt.s32.totalorder (!%p140_p10), %s409_s28, 31  ;;  %450 = vmatprep.mubr.msk.bf16.mxu0 (!%p140_p10), %vm632_vm0, %v631_v0 }
  0x12   : > { %s718_s27 = scalar_select %p86_p11, %s609_s11, %s88_s25  }
  0x13   : > { %p165_p13 = scmp.lt.s32.totalorder (!%p140_p10), %s617_s13, 1  ;;  %s162_s18 = sand.u32 (!%p140_p10), 1, %s605_s10  }
  0x14   : > { %s407_s21 = sshll.u32 (!%p140_p10), %s162_s18, 3  ;;  %s421_s24 = sshll.u32 (!%p140_p10), %s617_s13, 1 }
  0x15   : > { %s314_s25 = sadd.s32 (!%p140_p10), %s613_s12, %s421_s24  ;;  %s164_s26 = scalar_lea.vmem (!%p140_p10), [#allocation2], %s407_s21 }
  0x16   : > { %s633_s12 = smov (!%p140_p10), [#allocation2]  }
  0x18   : > { %s826_s28 = smov (!%p170_p12, %s409_s28), 31 }
  0x19   : > { %s410_s29 = sshll.u32 %s826_s28, 2  ;;  %s318_s28 = sshll.u32 %s164_s26, 4  ;;  %s751_s28 = int_to_ptr.vmem [resolvable:$true] %s318_s28 }
  0x1a   : > { %s724_s4 = scalar_lea.vmem %s808_s1, %s410_s29  ;;  %s422_s29 = sshll.u32 %s314_s25, 7 }
  0x1b   : > { %v527_v1 = vld [vmem:[%s724_s4] sm:$0xff]   ;;  %v528_v3 = vld [vmem:[%s724_s4 + $0x8] sm:$0xff]   ;;  %v529_v5 = vld [vmem:[%s724_s4 + $0x10] sm:$0xff]   ;;  %s166_s5 = scalar_select %p165_p13, %s617_s13, 1 }
  0x1c   : > { %v238_v2 = vsel %vm233_vm1, %v527_v1, 0  ;;  %v241_v4 = vsel %vm233_vm1, %v528_v3, 0  ;;  %v244_v6 = vsel %vm233_vm1, %v529_v5, 0  ;;  %v530_v7 = vld [vmem:[%s724_s4 + $0x18] sm:$0xff]   ;;  %v531_v9 = vld [vmem:[%s724_s4 + $0x20] sm:$0xff]   ;;  %v532_v11 = vld [vmem:[%s724_s4 + $0x28] sm:$0xff]  }
  0x1d   : > { %435 = vmatpush3.bf16.xpose.msra.mxu0 %v238_v2  ;;  %v247_v8 = vsel %vm233_vm1, %v530_v7, 0  ;;  %v250_v10 = vsel %vm233_vm1, %v531_v9, 0  ;;  %v253_v12 = vsel %vm233_vm1, %v532_v11, 0  ;;  %v533_v13 = vld [vmem:[%s724_s4 + $0x30] sm:$0xff]   ;;  %v534_v15 = vld [vmem:[%s724_s4 + $0x38] sm:$0xff]   ;;  %s408_s6 = sshll.u32 %s166_s5, 2  ;;  %s756_s4 = scalar_lea.hbm %s809_s2, %s422_s29 }
  0x1e   : > { %436 = vmatprep.subr.bf16.mxu0 %v631_v0  ;;  %v256_v14 = vsel %vm233_vm1, %v533_v13, 0  ;;  %v259_v16 = vsel %vm233_vm1, %v534_v15, 0  ;;  %s168_s17 = scalar_lea.vmem %s807_s0, %s408_s6  ;;  %s303_s5 = scalar_lea.sflag [#allocation3], %s162_s18 }
  0x1f   : > { %v176_v17 = vld [vmem:[%s168_s17] sm:$0xf]  ;;  %s535_s13 = scalar_lea.vmem %s751_s28, 128  ;;  %s539_s6 = sshll.u32 %s633_s12, 4  ;;  %s540_s6 = int_to_ptr.vmem [resolvable:$false] %s539_s6 }
  0x20   : > { %p536_p0 = scmp.ne.s32.totalorder %s751_s28, %s535_s13  ;;  %s541_s7 = scalar_lea.vmem %s540_s6, 256 }
  0x21   : > { %p542_p4 = scmp.lt.s32.totalorder %s751_s28, %s540_s6  ;;  %p543_p5 = scmp.lt.s32.totalorder %s541_s7, %s535_s13 }
  0x22   : > { %p537_p1 = pnand %p536_p0, %p700_p3 }
  0x23   : > { %p544_p6 = por %p543_p5, %p542_p4 }
  0x24   : > { %p538_p2 = pneg %p537_p1 }
  0x25   : > { %437 = vmatpush3.bf16.xpose.msra.mxu0 %v241_v4 }
  0x26   : > { %438 = vmatprep.subr.bf16.mxu0 %v631_v0  ;;  %p545_p7 = pnand %p544_p6, %p538_p2 }
  0x2d   : > { %439 = vmatpush3.bf16.xpose.msra.mxu0 %v244_v6 }
  0x2e   : > { %440 = vmatprep.subr.bf16.mxu0 %v631_v0 }
  0x35   : > { %441 = vmatpush3.bf16.xpose.msra.mxu0 %v247_v8 }
  0x36   : > { %442 = vmatprep.subr.bf16.mxu0 %v631_v0 }
  0x3d   : > { %443 = vmatpush3.bf16.xpose.msra.mxu0 %v250_v10 }
  0x3e   : > { %444 = vmatprep.subr.bf16.mxu0 %v631_v0 }
  0x45   : > { %445 = vmatpush3.bf16.xpose.msra.mxu0 %v253_v12 }
  0x46   : > { %446 = vmatprep.subr.bf16.mxu0 %v631_v0 }
  0x4d   : > { %447 = vmatpush3.bf16.xpose.msra.mxu0 %v256_v14 }
  0x4e   : > { %448 = vmatprep.subr.bf16.mxu0 %v631_v0 }
  0x55   : > { %449 = vmatpush3.bf16.xpose.msra.mxu0 %v259_v16 }
  0x5c   : > { %451 = vmatmul.mubr.msk.bf16.vlgmr.msra.gmra.mrb[0].mxu0 %vm233_vm1, %v176_v17 }
 0x12f   : > { %v295_v18 = vpop.f32.mrb[0].mxu0 }
 0x130   : > { %301 = vst [vmem:[%s164_s26] sm:$0xff] %v295_v18  ;;  %v452_v19 = vpop.f32.mrb[1].mxu0 }
 0x131   : > { %v298_v20 = vpop.f32.mrb[2].mxu0 }
 0x132   : > { %548 = shalt.err (!%p545_p7)
}
 0x133   : > { %s549_s8 = scalar_lea.hbm %s756_s4, 128  ;;  %s553_s21 = scalar_lea.hbm %s809_s2, 512 }
 0x134   : > { %p550_p9 = scmp.ne.s32.totalorder %s756_s4, %s549_s8  ;;  %p554_p12 = scmp.lt.u32.totalorder %s756_s4, %s809_s2 }
 0x135   : > { %p555_p13 = scmp.lt.u32.totalorder %s553_s21, %s549_s8  ;;  %p557_p1 = scmp.lt.u32.totalorder %s549_s8, %s756_s4 }
 0x136   : > { %p551_p10 = pnand %p550_p9, %p700_p3 }
 0x137   : > { %p556_p0 = por %p555_p13, %p554_p12 }
 0x138   : > { %p552_p11 = pneg %p551_p10 }
 0x139   : > { %p558_p2 = por %p557_p1, %p556_p0 }
 0x13b   : > { %p559_p4 = pnand %p558_p2, %p552_p11 }
 0x13d   : > { %562 = shalt.err (!%p559_p4)
}
 0x13e   : > { %454 = dma.vmem_to_hbm [thread:$0]  (%p700_p3), %s751_s28, 128, %s756_s4, %s303_s5   ;;  %v453_v21 = vpop.f32.mrb[3].mxu0 }
 0x13f PF: > { %p460_p5 = scmp.ge.s32.totalorder %s629_s16, 2  ;;  %s330_s26 = sand.u32 1, %s601_s9  }
 0x140   : > { %s331_s29 = scalar_lea.sflag [#allocation3], %s330_s26 }
 0x141   : > { %p457_p6 = pnand %p460_p5, %p709_p8 }
 0x143   : > { %596 = dma.done.wait (!%p457_p6), %s331_s29, 128  }
 0x144   : > { %598 = vsyncadd (!%p457_p6), %s331_s29, 4294967168  ;;  %s15_s16 = sadd.s32 1, %s629_s16   ;;  %s812_s9 = smov %s605_s10 }
 0x145   : > { %p12_p7 = scmp.ge.s32.totalorder %s15_s16, 6   ;;  %s813_s10 = smov %s609_s11 }
 0x146   : > { %s814_s11 = smov %s718_s27  ;;  %s815_s12 = smov %s621_s14 }
 0x147   : > { %s816_s13 = smov %s625_s15  ;;  %s817_s14 = smov %s820_s19 }
 0x148   : > { %s818_s15 = smov %s824_s20  ;;  %14 = sbr.rel (!%p12_p7) target bundleno = 5 (0x5), region = 66 }
 0x14f   :  { %336 = vsyncpa [#allocation3], 1 }
 0x150   :  { %338 = vsyncpa [#allocation3 + $0x1], 1 }

</bundles_post_ra>
